<compile_context>
chip_gen: v6e
topology: v6e:2x2x1
jax: 0.10.0
libtpu: 0.0.40
codegen_flags: <defaults>
</compile_context>

<pallas_src>
import functools

import jax
import jax.numpy as jnp
from jax.experimental import pallas as pl
from jax.experimental.pallas import tpu as pltpu


def _round_up(x, m):
    return (x + m - 1) // m * m


def _cdiv(a, b):
    return -(-a // b)


@functools.lru_cache(maxsize=1)
def _hw_caps():
    """Per-generation tile caps + scoped-VMEM ceiling.

    v5e/v6e: 128 MiB VMEM per TensorCore -> big tiles, generous explicit limit
    (their scoped defaults are only 16/32 MiB).
    v7x: 64 MiB VMEM -> roughly half-size tile caps and a <=48 MiB limit so the
    compiler keeps headroom for its own scratch and double-buffering.
    """
    vmem_bytes = 64 << 20
    try:
        vmem_bytes = int(getattr(pltpu.get_tpu_info(), "vmem_capacity_bytes",
                                 vmem_bytes))
    except Exception:
        pass
    if vmem_bytes >= (100 << 20):                    # v5e / v6e (128 MiB)
        return {"tm": 512, "tk": 2048, "tn": 512, "vmem_cap": 96 << 20}
    return {"tm": 256, "tk": 1024, "tn": 256, "vmem_cap": 48 << 20}   # v7x


def _pick_tile(dim, cap, align=128, prefer=256):
    """Whole dim if it fits under `cap`, else the largest `align`-multiple
    divisor, preferring `prefer`-multiples (fills the 256-wide MXU on v6e/v7x)."""
    if dim <= cap:
        return dim
    best = align
    best_pref = 0
    t = align
    while t <= cap:
        if dim % t == 0:
            best = t
            if t % prefer == 0:
                best_pref = t
        t += align
    if best_pref and 2 * best_pref >= best:
        return best_pref
    return best


def _pick_tm(m, cap):
    """Batch tile: whole dim for the typical tiny batches; split large batches
    into >=2 M blocks so both v7x TensorCores get work; fixed 16-aligned tile
    with a cdiv grid (masked partial last block) for very large flattened M."""
    if m <= cap:
        if m >= 256:
            return _round_up(_cdiv(m, 2), 16)
        return m
    return cap


def _linear_kernel_1step(x_ref, wT_ref, b_ref, o_ref):
    # Whole-K tile: straight MXU matmul + bias, no accumulator round-trip.
    o_ref[...] = (jnp.dot(x_ref[...], wT_ref[...],
                          preferred_element_type=jnp.float32)
                  + b_ref[...]).astype(o_ref.dtype)


def _linear_kernel_ksteps(x_ref, wT_ref, b_ref, o_ref, acc_ref):
    # K-tiled reduction into an f32 accumulator; bias folded into the init at
    # k==0 (saves a zero-fill and a separate VPU add on the final step).
    k = pl.program_id(2)

    @pl.when(k == 0)
    def _():
        acc_ref[...] = jnp.broadcast_to(b_ref[...], acc_ref.shape)

    acc_ref[...] += jnp.dot(x_ref[...], wT_ref[...],
                            preferred_element_type=jnp.float32)

    @pl.when(k == pl.num_programs(2) - 1)
    def _():
        o_ref[...] = acc_ref[...].astype(o_ref.dtype)


@functools.partial(jax.jit, static_argnames=("n_out",))
def _linear_pallas(x, wT_pad, b_pad, *, n_out):
    """y = x @ W.T + b (PyTorch nn.Linear semantics).

    x:      (B, K)   activations (any float dtype; fed to the MXU as bf16)
    wT_pad: (Kp, Np) weight, pre-transposed, zero-padded to 128-multiples, bf16
    b_pad:  (1, Np)  bias row, zero-padded, f32
    n_out:  logical out_features (static) — result is sliced back to (B, n_out)
    """
    out_dtype = x.dtype
    M, K = x.shape
    Kp, Np = wT_pad.shape
    caps = _hw_caps()

    # bf16 operands halve HBM traffic and hit the MXU's native rate; accumulate
    # in f32 (numerically ~= jnp.dot DEFAULT precision for f32 inputs on TPU).
    x = x.astype(jnp.bfloat16)
    if Kp != K:
        # K must be explicitly zero-padded (garbage in the K pad could be NaN
        # and 0*NaN != 0). The batch dim is NOT padded: the grid uses cdiv on M
        # with masked partial blocks, avoiding a full HBM copy of x.
        x = jnp.pad(x, ((0, 0), (0, Kp - K)))

    tm = _pick_tm(M, caps["tm"])
    tk = _pick_tile(Kp, caps["tk"])
    tn = _pick_tile(Np, caps["tn"])

    gm = _cdiv(M, tm)
    gn = Np // tn
    gk = Kp // tk

    # VMEM bookkeeping (double-buffered operands/outputs + f32 acc scratch).
    w_bufs = 3 if (gk > 1 and tm <= 64) else 2
    bpe_out = jnp.dtype(out_dtype).itemsize
    vmem_needed = (2 * tm * tk * 2
                   + w_bufs * tk * tn * 2
                   + 2 * tn * 4
                   + 2 * tm * tn * bpe_out
                   + (tm * tn * 4 if gk > 1 else 0))
    vmem_limit = int(min(caps["vmem_cap"], max(8 << 20, 2 * vmem_needed)))

    cost = pl.CostEstimate(
        flops=2 * M * Kp * Np,
        transcendentals=0,
        bytes_accessed=(M * Kp * 2 * gn        # x tile re-read once per N block
                        + Kp * Np * 2 * gm     # wT tile re-read once per M block
                        + Np * 4
                        + M * Np * bpe_out),
    )

    if gk == 1:
        # Common path for this module: single K step, bias fused into the store.
        grid = (gm, gn)
        in_specs = [
            pl.BlockSpec((tm, Kp), lambda i, j: (i, 0)),    # x
            pl.BlockSpec((Kp, tn), lambda i, j: (0, j)),    # W^T
            pl.BlockSpec((1, tn), lambda i, j: (0, j)),     # bias
        ]
        out_specs = pl.BlockSpec((tm, tn), lambda i, j: (i, j))
        scratch_shapes = ()
        kernel = _linear_kernel_1step
        dims = ("parallel", "parallel")
    else:
        # K-tiled reduction (K innermost / "arbitrary" so the output tile stays
        # resident). Deeper buffering on the dominant wT DMA stream when the
        # per-step compute is tiny (small M) and K could not be one tile.
        wt_kwargs = {"pipeline_mode": pl.Buffered(3)} if tm <= 64 else {}
        grid = (gm, gn, gk)
        in_specs = [
            pl.BlockSpec((tm, tk), lambda i, j, k: (i, k)),                 # x
            pl.BlockSpec((tk, tn), lambda i, j, k: (k, j), **wt_kwargs),    # W^T
            pl.BlockSpec((1, tn), lambda i, j, k: (0, j)),                  # bias
        ]
        out_specs = pl.BlockSpec((tm, tn), lambda i, j, k: (i, j))
        scratch_shapes = (pltpu.VMEM((tm, tn), jnp.float32),)
        kernel = _linear_kernel_ksteps
        dims = ("parallel", "parallel", "arbitrary")

    out = pl.pallas_call(
        kernel,
        out_shape=jax.ShapeDtypeStruct((M, Np), out_dtype),
        grid_spec=pltpu.PrefetchScalarGridSpec(
            num_scalar_prefetch=0,
            grid=grid,
            in_specs=in_specs,
            out_specs=out_specs,
            scratch_shapes=scratch_shapes,
        ),
        compiler_params=pltpu.CompilerParams(
            dimension_semantics=dims,
            vmem_limit_bytes=vmem_limit,
        ),
        cost_estimate=cost,
    )(x, wT_pad, b_pad)

    return out[:, :n_out]


class LinearConnection:
    """JAX/Pallas port of the PyTorch `Linear` connection module."""

    def __init__(self, bidirectional, hidden_size_encoder, hidden_size_decoder, key):
        num_directions = int(bidirectional) + 1
        in_features = num_directions * hidden_size_encoder
        out_features = hidden_size_decoder
        self.in_features = in_features
        self.out_features = out_features
        self.connection_possibility_status = (in_features == out_features)

        # Deterministic parameter init (mimics nn.Linear's uniform(-1/sqrt(in), 1/sqrt(in))).
        kw, kb = jax.random.split(key)
        bound = 1.0 / (in_features ** 0.5)
        self.weight = jax.random.uniform(
            kw, (out_features, in_features), jnp.float32, -bound, bound)
        self.bias = jax.random.uniform(
            kb, (out_features,), jnp.float32, -bound, bound)

        # One-time layout prep for the kernel:
        #   * pre-transpose W -> (K, N) so the kernel is a straight MXU matmul
        #   * zero-pad K and N up to 128-multiples -> lane-dense, unmasked stores
        #   * store the weight as bf16 (f32 accumulation happens in the kernel)
        Kp = _round_up(in_features, 128)
        Np = _round_up(out_features, 128)
        wT = jnp.transpose(self.weight)                                     # (K, N)
        self.weight_T_padded = jnp.pad(
            wT, ((0, Kp - in_features), (0, Np - out_features))).astype(jnp.bfloat16)
        self.bias_padded = jnp.pad(
            self.bias, (0, Np - out_features)).reshape(1, Np)               # f32

    def __call__(self, x):
        if self.connection_possibility_status:
            return x                       # identity path — no kernel needed
        # Support (..., in_features) by flattening leading dims, as nn.Linear does.
        lead = x.shape[:-1]
        x2d = x.reshape(-1, x.shape[-1])
        y2d = _linear_pallas(x2d, self.weight_T_padded, self.bias_padded,
                             n_out=self.out_features)
        return y2d.reshape(*lead, self.out_features)


if __name__ == "__main__":
    key = jax.random.PRNGKey(0)
    k_param, k_x = jax.random.split(key)

    # bf16-operand / f32-accumulate tolerance vs. the pure-f32 reference.
    ATOL = RTOL = 3e-2

    def check(mod, x):
        y = jax.block_until_ready(mod(x))
        y_ref = x @ mod.weight.T + mod.bias
        assert y.shape == y_ref.shape
        assert jnp.allclose(y, y_ref, atol=ATOL, rtol=RTOL), \
            float(jnp.max(jnp.abs(y - y_ref)))
        return y

    # Case 1: bidirectional encoder, hidden_enc=64, hidden_dec=32 -> mismatch,
    # kernel path; single K step (K=128), N padded 32 -> 128 then sliced back.
    mod1 = LinearConnection(True, 64, 32, k_param)
    x1 = jax.random.normal(k_x, (8, 128), jnp.float32)
    check(mod1, x1)

    # Case 2: ragged batch (5, no padding of M) + K=640 covered by one whole-K tile.
    mod2 = LinearConnection(True, 320, 100, k_param)
    x2 = jax.random.normal(k_x, (5, 640), jnp.float32)
    check(mod2, x2)

    # Case 3: K=50 (non-128-multiple -> explicit K zero-pad), out=96, leading dims.
    mod3 = LinearConnection(False, 50, 96, k_param)
    x3 = jax.random.normal(k_x, (2, 2, 50), jnp.float32)
    y3 = jax.block_until_ready(mod3(x3))
    y3_ref = x3.reshape(-1, 50) @ mod3.weight.T + mod3.bias
    assert y3.shape == (2, 2, 96)
    assert jnp.allclose(y3.reshape(-1, 96), y3_ref, atol=ATOL, rtol=RTOL)

    # Case 4: K=2560 exercises the multi-K accumulator kernel (bias folded into
    # the k==0 init) on every TPU generation's tile caps.
    mod4 = LinearConnection(True, 1280, 96, k_param)
    x4 = jax.random.normal(k_x, (80, 2560), jnp.float32)
    check(mod4, x4)

    # Case 5: identity path (dims match -> passthrough, no kernel).
    mod_id = LinearConnection(False, 32, 32, k_param)
    x_id = jax.random.normal(k_x, (8, 32), jnp.float32)
    assert jnp.array_equal(mod_id(x_id), x_id)

    print("KERNEL_OK")
</pallas_src>

<mosaic_0001>
module attributes {stable_mosaic.version = 11 : i64} {
  func.func @_linear_kernel_1step(%arg0: i32, %arg1: i32, %arg2: memref<8x128xbf16, #tpu.memory_space<vmem>>, %arg3: memref<128x128xbf16, #tpu.memory_space<vmem>>, %arg4: memref<1x128xf32, #tpu.memory_space<vmem>>, %arg5: memref<8x128xf32, #tpu.memory_space<vmem>>) attributes {dimension_semantics = [#tpu.dimension_semantics<parallel>, #tpu.dimension_semantics<parallel>], iteration_bounds = array<i64: 1, 1>, scalar_prefetch = 0 : i64, scratch_operands = 0 : i64, tpu.core_type = #tpu.core_type<tc>, window_params = [{transform_indices = @transform_0, window_bounds = array<i64: 8, 128>}, {transform_indices = @transform_1, window_bounds = array<i64: 128, 128>}, {transform_indices = @transform_2, window_bounds = array<i64: 1, 128>}, {transform_indices = @transform_3, window_bounds = array<i64: 8, 128>}]} {
    %c0 = arith.constant 0 : index
    %c0_0 = arith.constant 0 : index
    %0 = vector.load %arg2[%c0, %c0_0] : memref<8x128xbf16, #tpu.memory_space<vmem>>, vector<8x128xbf16>
    %c0_1 = arith.constant 0 : index
    %c0_2 = arith.constant 0 : index
    %1 = vector.load %arg3[%c0_1, %c0_2] : memref<128x128xbf16, #tpu.memory_space<vmem>>, vector<128x128xbf16>
    %cst = arith.constant dense<0.000000e+00> : vector<8x128xf32>
    %2 = tpu.matmul %0, %1, %cst {dimension_numbers = #tpu.dot_dimension_numbers<[1], [0], [0], [1], [0, 0, 1, 1], [], []>} : vector<8x128xbf16>, vector<128x128xbf16>, vector<8x128xf32> -> vector<8x128xf32>
    %c0_3 = arith.constant 0 : index
    %c0_4 = arith.constant 0 : index
    %3 = vector.load %arg4[%c0_3, %c0_4] : memref<1x128xf32, #tpu.memory_space<vmem>>, vector<1x128xf32>
    %4 = vector.broadcast %3 : vector<1x128xf32> to vector<8x128xf32>
    %5 = arith.addf %2, %4 : vector<8x128xf32>
    %c0_5 = arith.constant 0 : index
    %c0_6 = arith.constant 0 : index
    %6 = vector.load %arg5[%c0_5, %c0_6] : memref<8x128xf32, #tpu.memory_space<vmem>>, vector<8x128xf32>
    tpu.vector_store %arg5[%c0_5, %c0_6], %5 {strides = array<i32>} : memref<8x128xf32, #tpu.memory_space<vmem>>, vector<8x128xf32>,
    return
  }
  func.func @transform_0(%arg0: i32, %arg1: i32) -> (i32, i32) {
    %c0_i32 = arith.constant 0 : i32
    %c0_i32_0 = arith.constant 0 : i32
    return %arg0, %c0_i32 : i32, i32
  }
  func.func @transform_1(%arg0: i32, %arg1: i32) -> (i32, i32) {
    %c0_i32 = arith.constant 0 : i32
    %c0_i32_0 = arith.constant 0 : i32
    return %c0_i32, %arg1 : i32, i32
  }
  func.func @transform_2(%arg0: i32, %arg1: i32) -> (i32, i32) {
    %c0_i32 = arith.constant 0 : i32
    %c0_i32_0 = arith.constant 0 : i32
    return %c0_i32, %arg1 : i32, i32
  }
  func.func @transform_3(%arg0: i32, %arg1: i32) -> (i32, i32) {
    %c0_i32 = arith.constant 0 : i32
    return %arg0, %arg1 : i32, i32
  }
}

</mosaic_0001>

<bundles_post_ra>
// kernel: _linear_pallas.1
= control target key start
LH: loop header
LB: loop body
LE: loop exit
PB: predicated region body
PF: predicated region fallthrough
CT: control target
= control target key end

     0   :  { %8 = vsyncpa [#allocation3], 0  ;;  %s292_s0 = inlined_call_operand.vmem [shape: bf16[8,128], index: 0, kind: input, shape index: {}]   ;;  %s293_s1 = inlined_call_operand.hbm [shape: bf16[128,128], index: 1, kind: input, shape index: {}]   ;;  %s294_s2 = inlined_call_operand.vmem [shape: f32[1,128], index: 2, kind: input, shape index: {}]   ;;  %s295_s3 = inlined_call_operand.hbm [shape: f32[8,128], index: 3, kind: output, shape index: {}]  }
   0x1   :  { %9 = vsyncpa [#allocation4], 0  ;;  %s254_s12 = smov [#allocation2]  }
   0x2   :  { %s17_s13 = sshll.u32 %s254_s12, 4  ;;  %s18_s13 = int_to_ptr.vmem [resolvable:$true] %s17_s13 }
   0x3   :  { %s218_s14 = scalar_lea.vmem %s18_s13, 1024  ;;  %p223_p1 = scmp.lt.s32.totalorder %s18_s13, %s18_s13 }
   0x4   :  { %p219_p0 = scmp.ne.s32.totalorder %s18_s13, %s218_s14  ;;  %p224_p2 = scmp.lt.s32.totalorder %s218_s14, %s218_s14 }
   0x6   :  { %p225_p3 = por %p224_p2, %p223_p1 }
   0x8   :  { %p226_p4 = pnand %p225_p3, %p219_p0 }
   0xa   :  { %229 = shalt.err (!%p226_p4)
}
   0xb   :  { %s255_s15 = smov 64   ;;  %s256_s16 = smov 4  }
   0xc   :  { %23 = dma.hbm_to_vmem [thread:$0]  %s293_s1, 1024, %s18_s13, [#allocation3], %s255_s15, %s255_s15, %s256_s16  }
   0xd   :  { %250 = dma.done.wait [#allocation3], 1024  }
   0xe   :  { %251 = vsyncadd [#allocation3], 4294966272  ;;  %v257_v0 = vmov 0.0   ;;  %vm258_vm0 = vmmov 0   ;;  %v202_v1 = vld [vmem:[#allocation2 + $0x38] sm:$0xff]   ;;  %v203_v2 = vld [vmem:[#allocation2 + $0x30] sm:$0xff]  }
   0xf   :  { %176 = vmatprep.subr.bf16.mxu0 %v257_v0  ;;  %192 = vmatprep.mubr.msk.bf16.mxu0 %vm258_vm0, %v257_v0  ;;  %v204_v3 = vld [vmem:[#allocation2 + $0x28] sm:$0xff]   ;;  %v205_v4 = vld [vmem:[#allocation2 + $0x20] sm:$0xff]   ;;  %v206_v5 = vld [vmem:[#allocation2 + $0x18] sm:$0xff]   ;;  %s259_s22 = smov [#allocation5]  }
  0x10   :  { %177 = vmatpush3.bf16.msra.mxu0 %v202_v1  ;;  %v207_v6 = vld [vmem:[#allocation2 + $0x10] sm:$0xff]   ;;  %v208_v7 = vld [vmem:[#allocation2 + $0x8] sm:$0xff]   ;;  %v209_v8 = vld [vmem:[#allocation2] sm:$0xff]   ;;  %s149_s23 = sshll.u32 %s259_s22, 4  ;;  %s150_s23 = int_to_ptr.vmem [resolvable:$true] %s149_s23 }
  0x11   :  { %178 = vmatprep.subr.bf16.mxu0 %v257_v0  ;;  %v30_v9 = vld [vmem:[%s292_s0] sm:$0xf]  ;;  %s230_s24 = scalar_lea.vmem %s150_s23, 128  ;;  %p235_p6 = scmp.lt.s32.totalorder %s150_s23, %s150_s23 }
  0x12   :  { %v158_v10 = vld [vmem:[%s294_s2] ss:$0 sm:$0xff]  ;;  %p231_p5 = scmp.ne.s32.totalorder %s150_s23, %s230_s24  ;;  %p236_p7 = scmp.lt.s32.totalorder %s230_s24, %s230_s24 }
  0x14   :  { %179 = vmatpush3.bf16.msra.mxu0 %v203_v2  ;;  %p237_p8 = por %p236_p7, %p235_p6 }
  0x15   :  { %180 = vmatprep.subr.bf16.mxu0 %v257_v0 }
  0x16   :  { %p238_p9 = pnand %p237_p8, %p231_p5 }
  0x18   :  { %181 = vmatpush3.bf16.msra.mxu0 %v204_v3 }
  0x19   :  { %182 = vmatprep.subr.bf16.mxu0 %v257_v0 }
  0x1c   :  { %183 = vmatpush3.bf16.msra.mxu0 %v205_v4 }
  0x1d   :  { %184 = vmatprep.subr.bf16.mxu0 %v257_v0 }
  0x20   :  { %185 = vmatpush3.bf16.msra.mxu0 %v206_v5 }
  0x21   :  { %186 = vmatprep.subr.bf16.mxu0 %v257_v0 }
  0x24   :  { %187 = vmatpush3.bf16.msra.mxu0 %v207_v6 }
  0x25   :  { %188 = vmatprep.subr.bf16.mxu0 %v257_v0 }
  0x28   :  { %189 = vmatpush3.bf16.msra.mxu0 %v208_v7 }
  0x29   :  { %190 = vmatprep.subr.bf16.mxu0 %v257_v0 }
  0x2c   :  { %191 = vmatpush3.bf16.msra.mxu0 %v209_v8 }
  0x2f   :  { %193 = vmatmul.mubr.bf16.vlgmr.msra.gmra.mxu0 %v30_v9 }
  0xef   :  { %v136_v11 = vpop.f32.mrf.mxu0 }
  0xf0   :  { %v137_v12 = vadd.f32 %v158_v10, %v136_v11 }
  0xf1   :  { %v194_v13 = vpop.f32.mrf.mxu0 }
  0xf2   :  { %142 = vst [vmem:[#allocation5] sm:$0xff] %v137_v12 }
  0xf3   :  { %v139_v14 = vpop.f32.mrf.mxu0 }
  0xf4   :  { %241 = shalt.err (!%p238_p9)
}
  0xf5   :  { %152 = dma.vmem_to_hbm [thread:$0]  %s150_s23, 128, %s295_s3, [#allocation4]   ;;  %v195_v15 = vpop.f32.mrf.mxu0 }
  0xf6   :  { %252 = dma.done.wait [#allocation4], 128  }
  0xf7   :  { %253 = vsyncadd [#allocation4], 4294967168 }
  0xf8   :  { %156 = vsyncpa [#allocation3], 1 }
  0xf9   :  { %157 = vsyncpa [#allocation4], 1 }

</bundles_post_ra>
